<compile_context>
chip_gen: v6e
topology: v6e:2x2x1
jax: 0.10.0
libtpu: 0.0.40
codegen_flags: <defaults>
</compile_context>

<pallas_src>
import jax
import jax.numpy as jnp
from jax.experimental import pallas as pl
from jax.experimental.pallas import tpu as pltpu


_TARGET_TILE_BYTES = 1 << 20  # ~1 MiB per f32 input tile


def _pick_tile(dim, align, max_tile):
    """Largest tile <= max_tile that is a multiple of `align` and divides `dim`.

    Falls back to the full extent (always a legal Pallas block shape).
    """
    if dim <= max_tile:
        return dim
    t = (max_tile // align) * align
    while t >= align:
        if dim % t == 0:
            return t
        t -= align
    # TODO(synk): mask/pad ragged tails instead of falling back to a full-extent block.
    return dim


def _stats_kernel(x_ref, sum_ref, sqsum_ref):
    # x_ref: (r_tile, hw_tile); accumulate per-row sum / sum-of-squares in f32.
    @pl.when(pl.program_id(1) == 0)
    def _():
        sum_ref[...] = jnp.zeros_like(sum_ref)
        sqsum_ref[...] = jnp.zeros_like(sqsum_ref)

    x = x_ref[...].astype(jnp.float32)
    sum_ref[...] += jnp.sum(x, axis=1, keepdims=True)
    sqsum_ref[...] += jnp.sum(x * x, axis=1, keepdims=True)


def _normalize_kernel(x_ref, s_ref, t_ref, o_ref):
    # y = x * s + t  with per-row (= per-channel) scale/shift: one multiply-add
    # per element; no divide / sqrt in the hot loop.
    x = x_ref[...].astype(jnp.float32)
    o_ref[...] = (x * s_ref[...] + t_ref[...]).astype(o_ref.dtype)


def batch_norm2d_train(x, gamma, beta, running_mean, running_var,
                       eps=1e-5, momentum=0.1, affine=True):
    """Training-mode BatchNorm2d forward matching the PyTorch module's formula.

    x: (N, C, H, W). Returns (y, new_running_mean, new_running_var); y is NCHW.
    Matches the module exactly: eps added OUTSIDE sqrt, biased batch variance
    used both for normalization and the running_var update.
    """
    N, C, H, W = x.shape
    HW = H * W
    NR = N * C
    L = N * HW

    # Free, contiguous view: (N, C, H, W) -> (N*C, H*W); row r has channel r % C.
    x2 = x.reshape(NR, HW)

    hw_tile = _pick_tile(HW, 128, 2048)
    max_rows = max(8, _TARGET_TILE_BYTES // (4 * hw_tile))
    r_tile = _pick_tile(NR, 8, max_rows)
    grid = (NR // r_tile, HW // hw_tile)

    # ---- Pass 1: per-row sum / sumsq (one-pass stats) ----------------------
    row_sum, row_sqsum = pl.pallas_call(
        _stats_kernel,
        grid_spec=pltpu.PrefetchScalarGridSpec(
            num_scalar_prefetch=0,
            grid=grid,
            in_specs=[pl.BlockSpec((r_tile, hw_tile), lambda i, j: (i, j))],
            out_specs=[
                pl.BlockSpec((r_tile, 1), lambda i, j: (i, 0)),
                pl.BlockSpec((r_tile, 1), lambda i, j: (i, 0)),
            ],
        ),
        out_shape=(
            jax.ShapeDtypeStruct((NR, 1), jnp.float32),
            jax.ShapeDtypeStruct((NR, 1), jnp.float32),
        ),
        compiler_params=pltpu.CompilerParams(
            dimension_semantics=("parallel", "arbitrary")),
    )(x2)

    # ---- Tiny O(C) glue: channel stats + folded scale/shift ----------------
    ch_sum = row_sum.reshape(N, C).sum(axis=0)
    ch_sqsum = row_sqsum.reshape(N, C).sum(axis=0)
    mu = ch_sum / L                                       # (C,)
    var = jnp.maximum(ch_sqsum / L - mu * mu, 0.0)        # biased, as in the module

    g = gamma.astype(jnp.float32) if affine else jnp.ones((C,), jnp.float32)
    b = beta.astype(jnp.float32) if affine else jnp.zeros((C,), jnp.float32)
    # Module formula: (x - mu) / (sqrt(var) + eps) * gamma + beta  (eps OUTSIDE sqrt).
    s = g / (jnp.sqrt(var) + eps)                         # (C,)
    t = b - mu * s                                        # (C,)

    # Per-row scale/shift (channel pattern repeats across the batch).
    s_rows = jnp.tile(s, N).reshape(NR, 1)
    t_rows = jnp.tile(t, N).reshape(NR, 1)

    # ---- Pass 2: normalize (pure multiply-add, lane-dense output) ----------
    y2 = pl.pallas_call(
        _normalize_kernel,
        grid_spec=pltpu.PrefetchScalarGridSpec(
            num_scalar_prefetch=0,
            grid=grid,
            in_specs=[
                pl.BlockSpec((r_tile, hw_tile), lambda i, j: (i, j)),
                pl.BlockSpec((r_tile, 1), lambda i, j: (i, 0)),
                pl.BlockSpec((r_tile, 1), lambda i, j: (i, 0)),
            ],
            out_specs=pl.BlockSpec((r_tile, hw_tile), lambda i, j: (i, j)),
        ),
        out_shape=jax.ShapeDtypeStruct((NR, HW), x.dtype),
        compiler_params=pltpu.CompilerParams(
            dimension_semantics=("parallel", "parallel")),
    )(x2, s_rows, t_rows)

    y = y2.reshape(N, C, H, W)

    mu_o = mu.astype(running_mean.dtype)
    var_o = var.astype(running_var.dtype)
    new_running_mean = running_mean * (1.0 - momentum) + mu_o * momentum
    new_running_var = running_var * (1.0 - momentum) + var_o * momentum
    return y, new_running_mean, new_running_var


# TODO(synk): taskBatchNorm2d's task-posterior mean (np.random.choice subsampling,
# task_prior_mean updates) and the additive torch.randn noise are host-side
# stochastic control flow with no clean Pallas equivalent; only the shared
# BatchNorm2d normalization formula (the heavy per-element work) is kernelized.
# TODO(synk): eval-mode branch (running stats) is the same scale/shift kernel
# with mu/var swapped for running_mean/running_var.


if __name__ == "__main__":
    num_features = 4
    N, C, H, W = 2, num_features, 16, 16

    key = jax.random.PRNGKey(0)
    x = jax.random.normal(key, (N, C, H, W), dtype=jnp.float32)

    # Deterministic parameter init matching the module's __init__.
    gamma = jnp.ones((C,), jnp.float32)
    beta = jnp.zeros((C,), jnp.float32)
    running_mean = jnp.zeros((C,), jnp.float32)
    running_var = jnp.ones((C,), jnp.float32)
    eps, momentum = 1e-5, 0.1

    y, rm, rv = batch_norm2d_train(x, gamma, beta, running_mean, running_var,
                                   eps=eps, momentum=momentum, affine=True)
    jax.block_until_ready((y, rm, rv))

    # Pure-JAX reference of the module's training-mode forward.
    cx = jnp.transpose(x, (1, 0, 2, 3))
    mu_ref = cx.mean(axis=(2, 3)).mean(axis=-1)
    diff = cx - mu_ref[:, None, None, None]
    var_ref = (diff * diff).mean(axis=(1, 2, 3))
    norm = diff / (jnp.sqrt(var_ref)[:, None, None, None] + eps)
    norm = norm * gamma[:, None, None, None] + beta[:, None, None, None]
    y_ref = jnp.transpose(norm, (1, 0, 2, 3))
    rm_ref = running_mean * (1 - momentum) + mu_ref * momentum
    rv_ref = running_var * (1 - momentum) + var_ref * momentum

    assert jnp.allclose(y, y_ref, atol=1e-4, rtol=1e-5), "y mismatch"
    assert jnp.allclose(rm, rm_ref, atol=1e-5), "running_mean mismatch"
    assert jnp.allclose(rv, rv_ref, atol=1e-5), "running_var mismatch"
    print("KERNEL_OK")
</pallas_src>

<mosaic_0001>
module attributes {stable_mosaic.version = 11 : i64} {
  func.func @_stats_kernel(%arg0: i32, %arg1: i32, %arg2: memref<8x256xf32, #tpu.memory_space<vmem>>, %arg3: memref<8x1xf32, #tpu.memory_space<vmem>>, %arg4: memref<8x1xf32, #tpu.memory_space<vmem>>) attributes {dimension_semantics = [#tpu.dimension_semantics<parallel>, #tpu.dimension_semantics<arbitrary>], iteration_bounds = array<i64: 1, 1>, scalar_prefetch = 0 : i64, scratch_operands = 0 : i64, tpu.core_type = #tpu.core_type<tc>, window_params = [{transform_indices = @transform_0, window_bounds = array<i64: 8, 256>}, {transform_indices = @transform_1, window_bounds = array<i64: 8, 1>}, {transform_indices = @transform_2, window_bounds = array<i64: 8, 1>}]} {
    %c0_i32 = arith.constant 0 : i32
    %0 = arith.cmpi eq, %arg1, %c0_i32 : i32
    %1 = arith.extui %0 : i1 to i32
    %c0_i32_0 = arith.constant 0 : i32
    %2 = arith.cmpi ne, %1, %c0_i32_0 : i32
    scf.if %2 {
      %cst_11 = arith.constant 0.000000e+00 : f32
      %15 = vector.broadcast %cst_11 : f32 to vector<8x1xf32>
      %c0_12 = arith.constant 0 : index
      %c0_13 = arith.constant 0 : index
      %16 = vector.load %arg3[%c0_12, %c0_13] : memref<8x1xf32, #tpu.memory_space<vmem>>, vector<8x1xf32>
      tpu.vector_store %arg3[%c0_12, %c0_13], %15 {strides = array<i32>} : memref<8x1xf32, #tpu.memory_space<vmem>>, vector<8x1xf32>,
      %cst_14 = arith.constant 0.000000e+00 : f32
      %17 = vector.broadcast %cst_14 : f32 to vector<8x1xf32>
      %c0_15 = arith.constant 0 : index
      %c0_16 = arith.constant 0 : index
      %18 = vector.load %arg4[%c0_15, %c0_16] : memref<8x1xf32, #tpu.memory_space<vmem>>, vector<8x1xf32>
      tpu.vector_store %arg4[%c0_15, %c0_16], %17 {strides = array<i32>} : memref<8x1xf32, #tpu.memory_space<vmem>>, vector<8x1xf32>,
    } else {
    }
    %c0 = arith.constant 0 : index
    %c0_1 = arith.constant 0 : index
    %3 = vector.load %arg2[%c0, %c0_1] : memref<8x256xf32, #tpu.memory_space<vmem>>, vector<8x256xf32>
    %c0_2 = arith.constant 0 : index
    %c0_3 = arith.constant 0 : index
    %4 = vector.load %arg3[%c0_2, %c0_3] : memref<8x1xf32, #tpu.memory_space<vmem>>, vector<8x1xf32>
    %cst = arith.constant dense<0.000000e+00> : vector<8xf32>
    %5 = vector.multi_reduction <add>, %3, %cst [1] : vector<8x256xf32> to vector<8xf32>
    %6 = vector.shape_cast %5 : vector<8xf32> to vector<8x1xf32>
    %7 = arith.addf %4, %6 : vector<8x1xf32>
    %c0_4 = arith.constant 0 : index
    %c0_5 = arith.constant 0 : index
    %8 = vector.load %arg3[%c0_4, %c0_5] : memref<8x1xf32, #tpu.memory_space<vmem>>, vector<8x1xf32>
    tpu.vector_store %arg3[%c0_4, %c0_5], %7 {strides = array<i32>} : memref<8x1xf32, #tpu.memory_space<vmem>>, vector<8x1xf32>,
    %c0_6 = arith.constant 0 : index
    %c0_7 = arith.constant 0 : index
    %9 = vector.load %arg4[%c0_6, %c0_7] : memref<8x1xf32, #tpu.memory_space<vmem>>, vector<8x1xf32>
    %10 = arith.mulf %3, %3 : vector<8x256xf32>
    %cst_8 = arith.constant dense<0.000000e+00> : vector<8xf32>
    %11 = vector.multi_reduction <add>, %10, %cst_8 [1] : vector<8x256xf32> to vector<8xf32>
    %12 = vector.shape_cast %11 : vector<8xf32> to vector<8x1xf32>
    %13 = arith.addf %9, %12 : vector<8x1xf32>
    %c0_9 = arith.constant 0 : index
    %c0_10 = arith.constant 0 : index
    %14 = vector.load %arg4[%c0_9, %c0_10] : memref<8x1xf32, #tpu.memory_space<vmem>>, vector<8x1xf32>
    tpu.vector_store %arg4[%c0_9, %c0_10], %13 {strides = array<i32>} : memref<8x1xf32, #tpu.memory_space<vmem>>, vector<8x1xf32>,
    return
  }
  func.func @transform_0(%arg0: i32, %arg1: i32) -> (i32, i32) {
    %c0_i32 = arith.constant 0 : i32
    return %arg0, %arg1 : i32, i32
  }
  func.func @transform_1(%arg0: i32, %arg1: i32) -> (i32, i32) {
    %c0_i32 = arith.constant 0 : i32
    %c0_i32_0 = arith.constant 0 : i32
    return %arg0, %c0_i32 : i32, i32
  }
  func.func @transform_2(%arg0: i32, %arg1: i32) -> (i32, i32) {
    %c0_i32 = arith.constant 0 : i32
    %c0_i32_0 = arith.constant 0 : i32
    return %arg0, %c0_i32 : i32, i32
  }
}

</mosaic_0001>

<bundles_post_ra>
// kernel: tpu_custom_call.1
= control target key start
LH: loop header
LB: loop body
LE: loop exit
PB: predicated region body
PF: predicated region fallthrough
CT: control target
= control target key end

     0   :  { %8 = vsyncpa [#allocation3], 0  ;;  %s79_s9 = smov [#allocation2]   ;;  %s121_s0 = inlined_call_operand.hbm [shape: f32[8,256], index: 0, kind: input, shape index: {}]   ;;  %s122_s1 = inlined_call_operand.vmem [shape: f32[8,1], index: 1, kind: output, shape index: {0}]   ;;  %s123_s2 = inlined_call_operand.vmem [shape: f32[8,1], index: 2, kind: output, shape index: {1}]  }
   0x1   :  { %s15_s10 = sshll.u32 %s79_s9, 4  ;;  %s16_s10 = int_to_ptr.vmem [resolvable:$true] %s15_s10 }
   0x2   :  { %s65_s11 = scalar_lea.vmem %s16_s10, 256  ;;  %p70_p1 = scmp.lt.s32.totalorder %s16_s10, %s16_s10 }
   0x3   :  { %p66_p0 = scmp.ne.s32.totalorder %s16_s10, %s65_s11  ;;  %p71_p2 = scmp.lt.s32.totalorder %s65_s11, %s65_s11 }
   0x5   :  { %p72_p3 = por %p71_p2, %p70_p1 }
   0x7   :  { %p73_p4 = pnand %p72_p3, %p66_p0 }
   0x9   :  { %76 = shalt.err (!%p73_p4)
}
   0xa   :  { %18 = dma.hbm_to_vmem [thread:$0]  %s121_s0, 256, %s16_s10, [#allocation3]  }
   0xb   :  { %77 = dma.done.wait [#allocation3], 256  }
   0xc   :  { %78 = vsyncadd [#allocation3], 4294967040  ;;  %vm26_vm0 = vcmask 7168   ;;  %v80_v0 = vmov 0.0   ;;  %v29_v1 = vld [vmem:[#allocation2] sm:$0xff]  ;;  %v30_v2 = vld [vmem:[#allocation2 + $0x8] sm:$0xff] }
   0xd   :  { %27 = vst.msk [vmem:[%s122_s1] sm:$0xff] %vm26_vm0, %v80_v0  ;;  %28 = vst.msk [vmem:[%s123_s2] sm:$0xff] %vm26_vm0, %v80_v0  ;;  %v32_v3 = vadd.f32 %v30_v2, %v29_v1  ;;  %v39_v4 = vmul.f32 %v29_v1, %v29_v1  ;;  %v40_v5 = vmul.f32 %v30_v2, %v30_v2 }
   0xf   :  { %33 = vadd.xlane.f32.xlu0 %v32_v3  ;;  %v41_v6 = vadd.f32 %v40_v5, %v39_v4 }
  0x13   :  { %42 = vadd.xlane.f32.xlu0 %v41_v6 }
  0x14   :  { %v31_v7 = vld [vmem:[%s122_s1] sm:$0xff] }
  0x15   :  { %v38_v10 = vld [vmem:[%s123_s2] sm:$0xff] }
  0x98   :  { %v34_v8 = vpop.xlane.xlu0 %33 }
  0x99   :  { %v35_v9 = vadd.f32 %v34_v8, %v31_v7 }
  0x9b   :  { %37 = vst.msk [vmem:[%s122_s1] sm:$0xff] %vm26_vm0, %v35_v9 }
  0x9c   :  { %v43_v11 = vpop.xlane.xlu0 %42 }
  0x9d   :  { %v44_v12 = vadd.f32 %v43_v11, %v38_v10 }
  0x9f   :  { %45 = vst.msk [vmem:[%s123_s2] sm:$0xff] %vm26_vm0, %v44_v12 }
  0xa0   :  { %54 = vsyncpa [#allocation3], 1 }

</bundles_post_ra>
